<compile_context>
chip_gen: v7x
topology: tpu7x:2x2x1
jax: 0.10.0
libtpu: 0.0.40
codegen_flags: <defaults>
</compile_context>

<pallas_src>
import jax
import jax.numpy as jnp
from jax.experimental import pallas as pl
from jax.experimental.pallas import tpu as pltpu


def _gating_kernel(b_ref, x1_ref, x2_ref, x3_ref, xe_ref,
                   w1_ref, w2_ref, w3_ref, we_ref, out_ref):
    # b_ref  : (1,)              SMEM bias of the first hidden projection
    # x*_ref : (TB, H*R)         lane-dense repacked hidden features
    # xe_ref : (TB, E*R)         lane-dense repacked token embedding
    # w*_ref : (H*R, R)/(E*R, R) block-diagonal projection weights (VMEM-resident)
    # out_ref: (TB, R)           gate probabilities (repacked)
    s = jnp.dot(x1_ref[...], w1_ref[...], preferred_element_type=jnp.float32)
    s = s + jnp.dot(x2_ref[...], w2_ref[...], preferred_element_type=jnp.float32)
    s = s + jnp.dot(x3_ref[...], w3_ref[...], preferred_element_type=jnp.float32)
    s = s + jnp.dot(xe_ref[...], we_ref[...], preferred_element_type=jnp.float32)
    s = s + b_ref[0]
    # Exact sigmoid: the kernel is HBM-bandwidth bound, so the exact divide is
    # free; 1/(1+exp(-x)) is safe at both tails (inf -> 0, 0 -> 1).
    gate = 1.0 / (1.0 + jnp.exp(-s))
    out_ref[...] = gate.astype(out_ref.dtype)


def _block_diag_weight(w, repack):
    """(1, K) nn.Linear weight -> (K*repack, repack) block-diagonal column matrix.

    Column r holds w in rows [r*K, (r+1)*K), zeros elsewhere, so
    (B/R, K*R) @ (K*R, R) computes all R per-row projections in one MXU dot.
    """
    k = w.shape[-1]
    col = w.reshape(k)
    eye = jnp.eye(repack, dtype=w.dtype)            # (R, R)
    blk = eye[:, None, :] * col[None, :, None]      # (R, K, R)
    return blk.reshape(repack * k, repack)


def butd_gating_function(h1, h2, h3, token_embedding, w1, w2, w3, we, b1,
                         *, repack=8, block_rows=1024,
                         vmem_limit_bytes=32 * 1024 * 1024,
                         xla_fallback_max_batch=0):
    """h1/h2/h3: (B, H), token_embedding: (B, E), weights: (1, H)/(1, E), b1: (1,) -> (B, 1)."""
    B, H = h1.shape
    _, E = token_embedding.shape
    assert h2.shape == (B, H) and h3.shape == (B, H)
    assert w1.shape == (1, H) and w2.shape == (1, H) and w3.shape == (1, H)
    assert we.shape == (1, E) and b1.shape == (1,)

    # Tiny batches are pure fixed overhead for a custom kernel; production
    # callers can set xla_fallback_max_batch (e.g. 64) to use fused XLA there.
    if B <= xla_fallback_max_batch:
        s = h1 @ w1.T + b1 + h2 @ w2.T + h3 @ w3.T + token_embedding @ we.T
        return jax.nn.sigmoid(s).astype(h1.dtype)

    # Pad batch to a multiple of the repack factor (no-op when already aligned).
    # TODO(synk): for production ragged batches, mask the tail instead of the
    # full-copy jnp.pad.
    pad = (-B) % repack
    if pad:
        cfg = ((0, pad), (0, 0))
        h1 = jnp.pad(h1, cfg)
        h2 = jnp.pad(h2, cfg)
        h3 = jnp.pad(h3, cfg)
        token_embedding = jnp.pad(token_embedding, cfg)
    bp = B + pad
    n_rows = bp // repack

    # Lane-dense repack: contiguous row-major reshape => free (no HBM traffic).
    x1 = h1.reshape(n_rows, H * repack)
    x2 = h2.reshape(n_rows, H * repack)
    x3 = h3.reshape(n_rows, H * repack)
    xe = token_embedding.reshape(n_rows, E * repack)

    # Block-diagonal weights (built once per call; a few hundred KiB at most).
    w1b = _block_diag_weight(w1, repack)
    w2b = _block_diag_weight(w2, repack)
    w3b = _block_diag_weight(w3, repack)
    web = _block_diag_weight(we, repack)
    bias = b1.reshape(1).astype(jnp.float32)

    tb = min(block_rows, n_rows)          # rows per grid step (repacked rows)
    grid = (pl.cdiv(n_rows, tb),)

    smem = pltpu.MemorySpace.SMEM

    out = pl.pallas_call(
        _gating_kernel,
        grid=grid,
        out_shape=jax.ShapeDtypeStruct((n_rows, repack), h1.dtype),
        in_specs=[
            pl.BlockSpec(memory_space=smem),                          # bias (1,)
            pl.BlockSpec((tb, H * repack), lambda i: (i, 0)),          # x1
            pl.BlockSpec((tb, H * repack), lambda i: (i, 0)),          # x2
            pl.BlockSpec((tb, H * repack), lambda i: (i, 0)),          # x3
            pl.BlockSpec((tb, E * repack), lambda i: (i, 0)),          # xe
            pl.BlockSpec((H * repack, repack), lambda i: (0, 0)),      # w1 (resident)
            pl.BlockSpec((H * repack, repack), lambda i: (0, 0)),      # w2 (resident)
            pl.BlockSpec((H * repack, repack), lambda i: (0, 0)),      # w3 (resident)
            pl.BlockSpec((E * repack, repack), lambda i: (0, 0)),      # we (resident)
        ],
        out_specs=pl.BlockSpec((tb, repack), lambda i: (i, 0)),
        compiler_params=pltpu.CompilerParams(
            dimension_semantics=("parallel",),
            vmem_limit_bytes=vmem_limit_bytes,
        ),
    )(bias, x1, x2, x3, xe, w1b, w2b, w3b, web)

    # (B/R, R) -> (B, 1): free row-major reshape, then drop any padded rows.
    return out.reshape(bp, 1)[:B]


def _reference(h1, h2, h3, emb, w1, w2, w3, we, b1):
    s = (h1 @ w1.T + b1) + h2 @ w2.T + h3 @ w3.T + emb @ we.T
    return jax.nn.sigmoid(s)


if __name__ == "__main__":
    # Small shapes consistent with the module: batch=2, hidden_size=32, embedding_size=48.
    B, H, E = 2, 32, 48

    key = jax.random.PRNGKey(0)
    k_h1, k_h2, k_h3, k_e, k_w1, k_w2, k_w3, k_we, k_b = jax.random.split(key, 9)

    h1 = jax.random.normal(k_h1, (B, H), dtype=jnp.float32)
    h2 = jax.random.normal(k_h2, (B, H), dtype=jnp.float32)
    h3 = jax.random.normal(k_h3, (B, H), dtype=jnp.float32)
    emb = jax.random.normal(k_e, (B, E), dtype=jnp.float32)

    # nn.Linear weights: (out_features=1, in_features); only the first layer has a bias.
    w1 = jax.random.normal(k_w1, (1, H), dtype=jnp.float32) * 0.1
    w2 = jax.random.normal(k_w2, (1, H), dtype=jnp.float32) * 0.1
    w3 = jax.random.normal(k_w3, (1, H), dtype=jnp.float32) * 0.1
    we = jax.random.normal(k_we, (1, E), dtype=jnp.float32) * 0.1
    b1 = jax.random.normal(k_b, (1,), dtype=jnp.float32) * 0.1

    out = butd_gating_function(h1, h2, h3, emb, w1, w2, w3, we, b1)
    out = jax.block_until_ready(out)

    ref = _reference(h1, h2, h3, emb, w1, w2, w3, we, b1)
    assert out.shape == (B, 1)
    # Tolerance covers default-precision f32 MXU matmul vs the XLA reference.
    assert jnp.allclose(out, ref, atol=1e-3, rtol=1e-3)

    print("KERNEL_OK")
</pallas_src>

<mosaic_0001>
module attributes {stable_mosaic.version = 11 : i64} {
  func.func @_gating_kernel(%arg0: i32, %arg1: memref<1xf32, #tpu.memory_space<smem>>, %arg2: memref<1x256xf32, #tpu.memory_space<vmem>>, %arg3: memref<1x256xf32, #tpu.memory_space<vmem>>, %arg4: memref<1x256xf32, #tpu.memory_space<vmem>>, %arg5: memref<1x384xf32, #tpu.memory_space<vmem>>, %arg6: memref<256x8xf32, #tpu.memory_space<vmem>>, %arg7: memref<256x8xf32, #tpu.memory_space<vmem>>, %arg8: memref<256x8xf32, #tpu.memory_space<vmem>>, %arg9: memref<384x8xf32, #tpu.memory_space<vmem>>, %arg10: memref<1x8xf32, #tpu.memory_space<vmem>>) attributes {dimension_semantics = [#tpu.dimension_semantics<parallel>], iteration_bounds = array<i64: 1>, scalar_prefetch = 0 : i64, scratch_operands = 0 : i64, tpu.core_type = #tpu.core_type<tc>, window_params = [{transform_indices = @transform_0, window_bounds = array<i64: 1>}, {transform_indices = @transform_1, window_bounds = array<i64: 1, 256>}, {transform_indices = @transform_2, window_bounds = array<i64: 1, 256>}, {transform_indices = @transform_3, window_bounds = array<i64: 1, 256>}, {transform_indices = @transform_4, window_bounds = array<i64: 1, 384>}, {pipeline_mode = #tpu.pipeline_mode<synchronous>, transform_indices = @transform_5, window_bounds = array<i64: 256, 8>}, {pipeline_mode = #tpu.pipeline_mode<synchronous>, transform_indices = @transform_6, window_bounds = array<i64: 256, 8>}, {pipeline_mode = #tpu.pipeline_mode<synchronous>, transform_indices = @transform_7, window_bounds = array<i64: 256, 8>}, {pipeline_mode = #tpu.pipeline_mode<synchronous>, transform_indices = @transform_8, window_bounds = array<i64: 384, 8>}, {transform_indices = @transform_9, window_bounds = array<i64: 1, 8>}]} {
    %c0 = arith.constant 0 : index
    %c0_0 = arith.constant 0 : index
    %0 = vector.load %arg2[%c0, %c0_0] : memref<1x256xf32, #tpu.memory_space<vmem>>, vector<1x256xf32>
    %c0_1 = arith.constant 0 : index
    %c0_2 = arith.constant 0 : index
    %1 = vector.load %arg6[%c0_1, %c0_2] : memref<256x8xf32, #tpu.memory_space<vmem>>, vector<256x8xf32>
    %cst = arith.constant dense<0.000000e+00> : vector<1x8xf32>
    %2 = tpu.matmul %0, %1, %cst {dimension_numbers = #tpu.dot_dimension_numbers<[1], [0], [0], [1], [0, 0, 1, 1], [], []>} : vector<1x256xf32>, vector<256x8xf32>, vector<1x8xf32> -> vector<1x8xf32>
    %c0_3 = arith.constant 0 : index
    %c0_4 = arith.constant 0 : index
    %3 = vector.load %arg3[%c0_3, %c0_4] : memref<1x256xf32, #tpu.memory_space<vmem>>, vector<1x256xf32>
    %c0_5 = arith.constant 0 : index
    %c0_6 = arith.constant 0 : index
    %4 = vector.load %arg7[%c0_5, %c0_6] : memref<256x8xf32, #tpu.memory_space<vmem>>, vector<256x8xf32>
    %cst_7 = arith.constant dense<0.000000e+00> : vector<1x8xf32>
    %5 = tpu.matmul %3, %4, %cst_7 {dimension_numbers = #tpu.dot_dimension_numbers<[1], [0], [0], [1], [0, 0, 1, 1], [], []>} : vector<1x256xf32>, vector<256x8xf32>, vector<1x8xf32> -> vector<1x8xf32>
    %6 = arith.addf %2, %5 : vector<1x8xf32>
    %c0_8 = arith.constant 0 : index
    %c0_9 = arith.constant 0 : index
    %7 = vector.load %arg4[%c0_8, %c0_9] : memref<1x256xf32, #tpu.memory_space<vmem>>, vector<1x256xf32>
    %c0_10 = arith.constant 0 : index
    %c0_11 = arith.constant 0 : index
    %8 = vector.load %arg8[%c0_10, %c0_11] : memref<256x8xf32, #tpu.memory_space<vmem>>, vector<256x8xf32>
    %cst_12 = arith.constant dense<0.000000e+00> : vector<1x8xf32>
    %9 = tpu.matmul %7, %8, %cst_12 {dimension_numbers = #tpu.dot_dimension_numbers<[1], [0], [0], [1], [0, 0, 1, 1], [], []>} : vector<1x256xf32>, vector<256x8xf32>, vector<1x8xf32> -> vector<1x8xf32>
    %10 = arith.addf %6, %9 : vector<1x8xf32>
    %c0_13 = arith.constant 0 : index
    %c0_14 = arith.constant 0 : index
    %11 = vector.load %arg5[%c0_13, %c0_14] : memref<1x384xf32, #tpu.memory_space<vmem>>, vector<1x384xf32>
    %c0_15 = arith.constant 0 : index
    %c0_16 = arith.constant 0 : index
    %12 = vector.load %arg9[%c0_15, %c0_16] : memref<384x8xf32, #tpu.memory_space<vmem>>, vector<384x8xf32>
    %cst_17 = arith.constant dense<0.000000e+00> : vector<1x8xf32>
    %13 = tpu.matmul %11, %12, %cst_17 {dimension_numbers = #tpu.dot_dimension_numbers<[1], [0], [0], [1], [0, 0, 1, 1], [], []>} : vector<1x384xf32>, vector<384x8xf32>, vector<1x8xf32> -> vector<1x8xf32>
    %14 = arith.addf %10, %13 : vector<1x8xf32>
    %c0_18 = arith.constant 0 : index
    %15 = memref.load %arg1[%c0_18] : memref<1xf32, #tpu.memory_space<smem>>
    %16 = vector.broadcast %15 : f32 to vector<1x8xf32>
    %17 = arith.addf %14, %16 : vector<1x8xf32>
    %cst_19 = arith.constant 0.000000e+00 : f32
    %18 = vector.broadcast %cst_19 : f32 to vector<1x8xf32>
    %19 = arith.subf %18, %17 : vector<1x8xf32>
    %20 = math.exp %19 : vector<1x8xf32>
    %cst_20 = arith.constant 1.000000e+00 : f32
    %21 = vector.broadcast %cst_20 : f32 to vector<1x8xf32>
    %22 = arith.addf %21, %20 : vector<1x8xf32>
    %cst_21 = arith.constant 1.000000e+00 : f32
    %23 = vector.broadcast %cst_21 : f32 to vector<1x8xf32>
    %24 = arith.divf %23, %22 : vector<1x8xf32>
    %c0_22 = arith.constant 0 : index
    %c0_23 = arith.constant 0 : index
    %25 = vector.load %arg10[%c0_22, %c0_23] : memref<1x8xf32, #tpu.memory_space<vmem>>, vector<1x8xf32>
    tpu.vector_store %arg10[%c0_22, %c0_23], %24 {strides = array<i32>} : memref<1x8xf32, #tpu.memory_space<vmem>>, vector<1x8xf32>,
    return
  }
  func.func @transform_0(%arg0: i32) -> i32 {
    %c0_i32 = arith.constant 0 : i32
    %c0_i32_0 = arith.constant 0 : i32
    return %c0_i32 : i32
  }
  func.func @transform_1(%arg0: i32) -> (i32, i32) {
    %c0_i32 = arith.constant 0 : i32
    %c0_i32_0 = arith.constant 0 : i32
    return %arg0, %c0_i32 : i32, i32
  }
  func.func @transform_2(%arg0: i32) -> (i32, i32) {
    %c0_i32 = arith.constant 0 : i32
    %c0_i32_0 = arith.constant 0 : i32
    return %arg0, %c0_i32 : i32, i32
  }
  func.func @transform_3(%arg0: i32) -> (i32, i32) {
    %c0_i32 = arith.constant 0 : i32
    %c0_i32_0 = arith.constant 0 : i32
    return %arg0, %c0_i32 : i32, i32
  }
  func.func @transform_4(%arg0: i32) -> (i32, i32) {
    %c0_i32 = arith.constant 0 : i32
    %c0_i32_0 = arith.constant 0 : i32
    return %arg0, %c0_i32 : i32, i32
  }
  func.func @transform_5(%arg0: i32) -> (i32, i32) {
    %c0_i32 = arith.constant 0 : i32
    %c0_i32_0 = arith.constant 0 : i32
    %c0_i32_1 = arith.constant 0 : i32
    return %c0_i32, %c0_i32_0 : i32, i32
  }
  func.func @transform_6(%arg0: i32) -> (i32, i32) {
    %c0_i32 = arith.constant 0 : i32
    %c0_i32_0 = arith.constant 0 : i32
    %c0_i32_1 = arith.constant 0 : i32
    return %c0_i32, %c0_i32_0 : i32, i32
  }
  func.func @transform_7(%arg0: i32) -> (i32, i32) {
    %c0_i32 = arith.constant 0 : i32
    %c0_i32_0 = arith.constant 0 : i32
    %c0_i32_1 = arith.constant 0 : i32
    return %c0_i32, %c0_i32_0 : i32, i32
  }
  func.func @transform_8(%arg0: i32) -> (i32, i32) {
    %c0_i32 = arith.constant 0 : i32
    %c0_i32_0 = arith.constant 0 : i32
    %c0_i32_1 = arith.constant 0 : i32
    return %c0_i32, %c0_i32_0 : i32, i32
  }
  func.func @transform_9(%arg0: i32) -> (i32, i32) {
    %c0_i32 = arith.constant 0 : i32
    %c0_i32_0 = arith.constant 0 : i32
    return %arg0, %c0_i32 : i32, i32
  }
}

</mosaic_0001>

<bundles_post_ra>
// kernel: tpu_custom_call.1
= control target key start
LH: loop header
LB: loop body
LE: loop exit
PB: predicated region body
PF: predicated region fallthrough
CT: control target
= control target key end

     0   :  { %v101_v47 = vlaneseq  ;;  %s1527_s0 = inlined_call_operand.<no memory space> [shape: f32[1], index: 0, kind: input, shape index: {}]   ;;  %s1528_s1 = inlined_call_operand.vmem [shape: f32[1,256], index: 1, kind: input, shape index: {}]   ;;  %s1529_s2 = inlined_call_operand.vmem [shape: f32[1,256], index: 2, kind: input, shape index: {}]   ;;  %s1530_s3 = inlined_call_operand.vmem [shape: f32[1,256], index: 3, kind: input, shape index: {}]   ;;  %s1531_s4 = inlined_call_operand.vmem [shape: f32[1,384], index: 4, kind: input, shape index: {}]   ;;  %s1532_s5 = inlined_call_operand.vmem [shape: f32[256,8], index: 5, kind: input, shape index: {}]   ;;  %s1533_s6 = inlined_call_operand.vmem [shape: f32[256,8], index: 6, kind: input, shape index: {}]   ;;  %s1534_s7 = inlined_call_operand.vmem [shape: f32[256,8], index: 7, kind: input, shape index: {}]   ;;  %s1535_s8 = inlined_call_operand.vmem [shape: f32[384,8], index: 8, kind: input, shape index: {}]   ;;  %s1536_s9 = inlined_call_operand.hbm [shape: f32[1,8], index: 9, kind: output, shape index: {}]  }
   0x1   :  { %v84_v0 = vld [vmem:[%s1533_s6 + $0x80] sm:$0xff]  ;;  %v85_v1 = vld [vmem:[%s1533_s6 + $0x88] sm:$0xff]  ;;  %v86_v11 = vld [vmem:[%s1533_s6 + $0x90] sm:$0xff] }
   0x2   :  { %v51_v2 = vld [vmem:[%s1532_s5 + $0x80] sm:$0xff]  ;;  %v800_v3 = vpack.c.bf16 %v85_v1, %v84_v0  ;;  %v52_v4 = vld [vmem:[%s1532_s5 + $0x88] sm:$0xff]  ;;  %v87_v13 = vld [vmem:[%s1533_s6 + $0x98] sm:$0xff]  ;;  %v1164_v61 = vshrl.u32 %v101_v47, 7 }
   0x3   :  { %v68_v5 = vld [vmem:[%s1533_s6] sm:$0xff]  ;;  %v69_v6 = vld [vmem:[%s1533_s6 + $0x8] sm:$0xff]  ;;  %v832_v7 = vpack.c.bf16 %v52_v4, %v51_v2  ;;  %v53_v14 = vld [vmem:[%s1532_s5 + $0x90] sm:$0xff]  ;;  %v804_v16 = vpack.c.bf16 %v87_v13, %v86_v11 }
   0x4   :  { %v802_v8 = vpack.c.bf16 %v69_v6, %v68_v5  ;;  %v35_v9 = vld [vmem:[%s1532_s5] sm:$0xff]  ;;  %v36_v10 = vld [vmem:[%s1532_s5 + $0x8] sm:$0xff]  ;;  %801 = vmatprep.subr.bf16.mxu0 %v800_v3  ;;  %v54_v15 = vld [vmem:[%s1532_s5 + $0x98] sm:$0xff] }
   0x5   :  { %v834_v12 = vpack.c.bf16 %v36_v10, %v35_v9  ;;  %833 = vmatprep.subr.bf16.mxu1 %v832_v7  ;;  %v836_v17 = vpack.c.bf16 %v54_v15, %v53_v14  ;;  %v70_v18 = vld [vmem:[%s1533_s6 + $0x10] sm:$0xff]  ;;  %v71_v19 = vld [vmem:[%s1533_s6 + $0x18] sm:$0xff]  ;;  %v88_v23 = vld [vmem:[%s1533_s6 + $0xa0] sm:$0xff]  ;;  %v1191_v10 = vsub.s32 1, %v1164_v61 }
   0x6   :  { %803 = vmatpush3.bf16.msra.mxu0 %v802_v8  ;;  %v37_v20 = vld [vmem:[%s1532_s5 + $0x10] sm:$0xff]  ;;  %v806_v21 = vpack.c.bf16 %v71_v19, %v70_v18  ;;  %v38_v22 = vld [vmem:[%s1532_s5 + $0x18] sm:$0xff]  ;;  %v89_v24 = vld [vmem:[%s1533_s6 + $0xa8] sm:$0xff] }
   0x7   :  { %835 = vmatpush3.bf16.msra.mxu1 %v834_v12  ;;  %805 = vmatprep.subr.bf16.mxu0 %v804_v16  ;;  %v838_v25 = vpack.c.bf16 %v38_v22, %v37_v20  ;;  %v808_v26 = vpack.c.bf16 %v89_v24, %v88_v23  ;;  %v55_v27 = vld [vmem:[%s1532_s5 + $0xa0] sm:$0xff]  ;;  %v56_v28 = vld [vmem:[%s1532_s5 + $0xa8] sm:$0xff]  ;;  %v90_v35 = vld [vmem:[%s1533_s6 + $0xb0] sm:$0xff] }
   0x8   :  { %837 = vmatprep.subr.bf16.mxu1 %v836_v17  ;;  %v72_v29 = vld [vmem:[%s1533_s6 + $0x20] sm:$0xff]  ;;  %v840_v30 = vpack.c.bf16 %v56_v28, %v55_v27  ;;  %v73_v31 = vld [vmem:[%s1533_s6 + $0x28] sm:$0xff]  ;;  %v91_v36 = vld [vmem:[%s1533_s6 + $0xb8] sm:$0xff] }
   0x9   :  { %v39_v32 = vld [vmem:[%s1532_s5 + $0x20] sm:$0xff]  ;;  %v40_v33 = vld [vmem:[%s1532_s5 + $0x28] sm:$0xff]  ;;  %v810_v34 = vpack.c.bf16 %v73_v31, %v72_v29  ;;  %v57_v37 = vld [vmem:[%s1532_s5 + $0xb0] sm:$0xff]  ;;  %v812_v39 = vpack.c.bf16 %v91_v36, %v90_v35 }
   0xa   :  { %807 = vmatpush3.bf16.msra.mxu0 %v806_v21  ;;  %v842_v38 = vpack.c.bf16 %v40_v33, %v39_v32  ;;  %v58_v40 = vld [vmem:[%s1532_s5 + $0xb8] sm:$0xff]  ;;  %v74_v41 = vld [vmem:[%s1533_s6 + $0x30] sm:$0xff]  ;;  %v92_v46 = vld [vmem:[%s1533_s6 + $0xc0] sm:$0xff] }
   0xb   :  { %839 = vmatpush3.bf16.msra.mxu1 %v838_v25  ;;  %809 = vmatprep.subr.bf16.mxu0 %v808_v26  ;;  %v75_v42 = vld [vmem:[%s1533_s6 + $0x38] sm:$0xff]  ;;  %v844_v43 = vpack.c.bf16 %v58_v40, %v57_v37  ;;  %v41_v44 = vld [vmem:[%s1532_s5 + $0x30] sm:$0xff]  ;;  %v93_v48 = vld [vmem:[%s1533_s6 + $0xc8] sm:$0xff] }
   0xc   :  { %841 = vmatprep.subr.bf16.mxu1 %v840_v30  ;;  %v42_v45 = vld [vmem:[%s1532_s5 + $0x38] sm:$0xff]  ;;  %v59_v49 = vld [vmem:[%s1532_s5 + $0xc0] sm:$0xff]  ;;  %v60_v50 = vld [vmem:[%s1532_s5 + $0xc8] sm:$0xff]  ;;  %v814_v51 = vpack.c.bf16 %v75_v42, %v74_v41  ;;  %v816_v53 = vpack.c.bf16 %v93_v48, %v92_v46 }
   0xd   :  { %v846_v52 = vpack.c.bf16 %v42_v45, %v41_v44  ;;  %v76_v54 = vld [vmem:[%s1533_s6 + $0x40] sm:$0xff]  ;;  %v77_v55 = vld [vmem:[%s1533_s6 + $0x48] sm:$0xff]  ;;  %v848_v57 = vpack.c.bf16 %v60_v50, %v59_v49  ;;  %v94_v59 = vld [vmem:[%s1533_s6 + $0xd0] sm:$0xff] }
   0xe   :  { %811 = vmatpush3.bf16.msra.mxu0 %v810_v34  ;;  %v43_v56 = vld [vmem:[%s1532_s5 + $0x40] sm:$0xff]  ;;  %v44_v58 = vld [vmem:[%s1532_s5 + $0x48] sm:$0xff]  ;;  %v95_v60 = vld [vmem:[%s1533_s6 + $0xd8] sm:$0xff]  ;;  %v818_v0 = vpack.c.bf16 %v77_v55, %v76_v54 }
   0xf   :  { %843 = vmatpush3.bf16.msra.mxu1 %v842_v38  ;;  %813 = vmatprep.subr.bf16.mxu0 %v812_v39  ;;  %v61_v62 = vld [vmem:[%s1532_s5 + $0xd0] sm:$0xff]  ;;  %v62_v63 = vld [vmem:[%s1532_s5 + $0xd8] sm:$0xff]  ;;  %v850_v1 = vpack.c.bf16 %v44_v58, %v43_v56  ;;  %v820_v2 = vpack.c.bf16 %v95_v60, %v94_v59  ;;  %v96_v8 = vld [vmem:[%s1533_s6 + $0xe0] sm:$0xff]  ;;  %v1253_v39 = vsub.s32 0, %v1164_v61 }
  0x10   :  { %845 = vmatprep.subr.bf16.mxu1 %v844_v43  ;;  %v78_v3 = vld [vmem:[%s1533_s6 + $0x50] sm:$0xff]  ;;  %v79_v4 = vld [vmem:[%s1533_s6 + $0x58] sm:$0xff]  ;;  %v852_v6 = vpack.c.bf16 %v62_v63, %v61_v62  ;;  %v97_v9 = vld [vmem:[%s1533_s6 + $0xe8] sm:$0xff] }
  0x11   :  { %v45_v5 = vld [vmem:[%s1532_s5 + $0x50] sm:$0xff]  ;;  %v46_v7 = vld [vmem:[%s1532_s5 + $0x58] sm:$0xff]  ;;  %v63_v11 = vld [vmem:[%s1532_s5 + $0xe0] sm:$0xff]  ;;  %v822_v13 = vpack.c.bf16 %v79_v4, %v78_v3  ;;  %v824_v17 = vpack.c.bf16 %v97_v9, %v96_v8 }
  0x12   :  { %815 = vmatpush3.bf16.msra.mxu0 %v814_v51  ;;  %v64_v12 = vld [vmem:[%s1532_s5 + $0xe8] sm:$0xff]  ;;  %v80_v14 = vld [vmem:[%s1533_s6 + $0x60] sm:$0xff]  ;;  %v854_v16 = vpack.c.bf16 %v46_v7, %v45_v5  ;;  %v98_v23 = vld [vmem:[%s1533_s6 + $0xf0] sm:$0xff] }
  0x13   :  { %847 = vmatpush3.bf16.msra.mxu1 %v846_v52  ;;  %817 = vmatprep.subr.bf16.mxu0 %v816_v53  ;;  %v81_v15 = vld [vmem:[%s1533_s6 + $0x68] sm:$0xff]  ;;  %v47_v18 = vld [vmem:[%s1532_s5 + $0x60] sm:$0xff]  ;;  %v856_v21 = vpack.c.bf16 %v64_v12, %v63_v11  ;;  %v99_v24 = vld [vmem:[%s1533_s6 + $0xf8] sm:$0xff] }
  0x14   :  { %849 = vmatprep.subr.bf16.mxu1 %v848_v57  ;;  %v67_v19 = vld [vmem:[%s1529_s2] sm:$0x3]  ;;  %v48_v22 = vld [vmem:[%s1532_s5 + $0x68] sm:$0xff]  ;;  %v65_v26 = vld [vmem:[%s1532_s5 + $0xf0] sm:$0xff]  ;;  %v826_v29 = vpack.c.bf16 %v81_v15, %v80_v14  ;;  %v828_v31 = vpack.c.bf16 %v99_v24, %v98_v23 }
  0x15   :  { %v1214_v20 = vld [vmem:[%s1528_s1] sm:$0x3]  ;;  %v108_v25 = vrot.slane %v67_v19, %v1191_v10  ;;  %v66_v27 = vld [vmem:[%s1532_s5 + $0xf8] sm:$0xff]  ;;  %v858_v30 = vpack.c.bf16 %v48_v22, %v47_v18  ;;  %v82_v32 = vld [vmem:[%s1533_s6 + $0x70] sm:$0xff]  ;;  %v104_v47 = vrot.slane %v67_v19, %v1253_v39 }
  0x16   :  { %819 = vmatpush3.bf16.msra.mxu0 %v818_v0  ;;  %v189_v28 = vrot.slane %v1214_v20, %v1191_v10  ;;  %v83_v33 = vld [vmem:[%s1533_s6 + $0x78] sm:$0xff]  ;;  %v49_v34 = vld [vmem:[%s1532_s5 + $0x70] sm:$0xff]  ;;  %v860_v35 = vpack.c.bf16 %v66_v27, %v65_v26  ;;  %v279_v37 = vld [vmem:[%s1534_s7 + $0x80] sm:$0xff]  ;;  %v185_v50 = vrot.slane %v1214_v20, %v1253_v39 }
  0x17   :  { %851 = vmatpush3.bf16.msra.mxu1 %v850_v1  ;;  %821 = vmatprep.subr.bf16.mxu0 %v820_v2  ;;  %v50_v36 = vld [vmem:[%s1532_s5 + $0x78] sm:$0xff]  ;;  %v280_v38 = vld [vmem:[%s1534_s7 + $0x88] sm:$0xff]  ;;  %v830_v40 = vpack.c.bf16 %v83_v33, %v82_v32  ;;  %v263_v43 = vld [vmem:[%s1534_s7] sm:$0xff] }
  0x18   :  { %853 = vmatprep.subr.bf16.mxu1 %v852_v6  ;;  %175 = vmatprep.mubr.f32.mxu0 %v108_v25  ;;  %v862_v41 = vpack.c.bf16 %v50_v36, %v49_v34  ;;  %v864_v42 = vpack.c.bf16 %v280_v38, %v279_v37  ;;  %v264_v44 = vld [vmem:[%s1534_s7 + $0x8] sm:$0xff]  ;;  %v281_v45 = vld [vmem:[%s1534_s7 + $0x90] sm:$0xff]  ;;  %v282_v46 = vld [vmem:[%s1534_s7 + $0x98] sm:$0xff] }
  0x19   :  { %256 = vmatprep.mubr.f32.mxu1 %v189_v28  ;;  %v265_v48 = vld [vmem:[%s1534_s7 + $0x10] sm:$0xff]  ;;  %v266_v49 = vld [vmem:[%s1534_s7 + $0x18] sm:$0xff]  ;;  %v866_v51 = vpack.c.bf16 %v264_v44, %v263_v43  ;;  %v283_v52 = vld [vmem:[%s1534_s7 + $0xa0] sm:$0xff]  ;;  %v868_v55 = vpack.c.bf16 %v282_v46, %v281_v45 }
  0x1a   :  { %823 = vmatpush3.bf16.msra.mxu0 %v822_v13  ;;  %v394_v53 = vld [vmem:[%s1535_s8 + $0x80] sm:$0xff]  ;;  %v395_v54 = vld [vmem:[%s1535_s8 + $0x88] sm:$0xff]  ;;  %v396_v63 = vld [vmem:[%s1535_s8 + $0x90] sm:$0xff]  ;;  %v870_v5 = vpack.c.bf16 %v266_v49, %v265_v48 }
  0x1b   :  { %855 = vmatpush3.bf16.msra.mxu1 %v854_v16  ;;  %825 = vmatprep.subr.bf16.mxu0 %v824_v17  ;;  %v284_v56 = vld [vmem:[%s1534_s7 + $0xa8] sm:$0xff]  ;;  %v896_v57 = vpack.c.bf16 %v395_v54, %v394_v53  ;;  %v378_v58 = vld [vmem:[%s1535_s8] sm:$0xff]  ;;  %v397_v0 = vld [vmem:[%s1535_s8 + $0x98] sm:$0xff] }
  0x1c   :  { %857 = vmatprep.subr.bf16.mxu1 %v856_v21  ;;  %v379_v59 = vld [vmem:[%s1535_s8 + $0x8] sm:$0xff]  ;;  %v1297_v62 = vld [vmem:[%s1530_s3] sm:$0x3]  ;;  %v900_v2 = vpack.c.bf16 %v397_v0, %v396_v63  ;;  %v380_v3 = vld [vmem:[%s1535_s8 + $0x10] sm:$0xff]  ;;  %v872_v8 = vpack.c.bf16 %v284_v56, %v283_v52 }
  0x1d   :  { %v898_v60 = vpack.c.bf16 %v379_v59, %v378_v58  ;;  %v303_v1 = vrot.slane %v1297_v62, %v1191_v10  ;;  %v381_v4 = vld [vmem:[%s1535_s8 + $0x18] sm:$0xff]  ;;  %v398_v6 = vld [vmem:[%s1535_s8 + $0xa0] sm:$0xff]  ;;  %v399_v7 = vld [vmem:[%s1535_s8 + $0xa8] sm:$0xff] }
  0x1e   :  { %827 = vmatpush3.bf16.msra.mxu0 %v826_v29  ;;  %v267_v9 = vld [vmem:[%s1534_s7 + $0x20] sm:$0xff]  ;;  %v268_v11 = vld [vmem:[%s1534_s7 + $0x28] sm:$0xff]  ;;  %v285_v12 = vld [vmem:[%s1534_s7 + $0xb0] sm:$0xff]  ;;  %v902_v13 = vpack.c.bf16 %v381_v4, %v380_v3  ;;  %v904_v15 = vpack.c.bf16 %v399_v7, %v398_v6 }
  0x1f   :  { %859 = vmatpush3.bf16.msra.mxu1 %v858_v30  ;;  %829 = vmatprep.subr.bf16.mxu0 %v828_v31  ;;  %v286_v14 = vld [vmem:[%s1534_s7 + $0xb8] sm:$0xff]  ;;  %v382_v16 = vld [vmem:[%s1535_s8 + $0x20] sm:$0xff]  ;;  %v383_v17 = vld [vmem:[%s1535_s8 + $0x28] sm:$0xff]  ;;  %v874_v20 = vpack.c.bf16 %v268_v11, %v267_v9 }
  0x20   :  { %861 = vmatprep.subr.bf16.mxu1 %v860_v35  ;;  %v400_v18 = vld [vmem:[%s1535_s8 + $0xb0] sm:$0xff]  ;;  %v401_v19 = vld [vmem:[%s1535_s8 + $0xb8] sm:$0xff]  ;;  %v876_v21 = vpack.c.bf16 %v286_v14, %v285_v12  ;;  %v287_v24 = vld [vmem:[%s1534_s7 + $0xc0] sm:$0xff]  ;;  %v906_v25 = vpack.c.bf16 %v383_v17, %v382_v16 }
  0x21   :  { %v269_v22 = vld [vmem:[%s1534_s7 + $0x30] sm:$0xff]  ;;  %v270_v23 = vld [vmem:[%s1534_s7 + $0x38] sm:$0xff]  ;;  %v288_v26 = vld [vmem:[%s1534_s7 + $0xc8] sm:$0xff]  ;;  %v908_v27 = vpack.c.bf16 %v401_v19, %v400_v18 }
  0x22   :  { %831 = vmatpush3.bf16.msra.mxu0 %v830_v40  ;;  %v384_v28 = vld [vmem:[%s1535_s8 + $0x30] sm:$0xff]  ;;  %v385_v29 = vld [vmem:[%s1535_s8 + $0x38] sm:$0xff]  ;;  %v402_v30 = vld [vmem:[%s1535_s8 + $0xc0] sm:$0xff]  ;;  %v878_v32 = vpack.c.bf16 %v270_v23, %v269_v22  ;;  %v880_v33 = vpack.c.bf16 %v288_v26, %v287_v24 }
  0x23   :  { %863 = vmatpush3.bf16.msra.mxu1 %v862_v41  ;;  %865 = vmatprep.subr.bf16.mxu0 %v864_v42  ;;  %v403_v31 = vld [vmem:[%s1535_s8 + $0xc8] sm:$0xff]  ;;  %v271_v34 = vld [vmem:[%s1534_s7 + $0x40] sm:$0xff]  ;;  %v289_v36 = vld [vmem:[%s1534_s7 + $0xd0] sm:$0xff]  ;;  %v910_v37 = vpack.c.bf16 %v385_v29, %v384_v28 }
  0x24   :  { %897 = vmatprep.subr.bf16.mxu1 %v896_v57  ;;  %v272_v35 = vld [vmem:[%s1534_s7 + $0x48] sm:$0xff]  ;;  %v290_v38 = vld [vmem:[%s1534_s7 + $0xd8] sm:$0xff]  ;;  %v912_v40 = vpack.c.bf16 %v403_v31, %v402_v30  ;;  %v386_v41 = vld [vmem:[%s1535_s8 + $0x40] sm:$0xff] }
  0x25   :  { %176 = vmatmul.mubr.f32.vlgmr.msra.gmra.mrb[0].mxu0 %v104_v47  ;;  %v387_v42 = vld [vmem:[%s1535_s8 + $0x48] sm:$0xff]  ;;  %v404_v43 = vld [vmem:[%s1535_s8 + $0xd0] sm:$0xff]  ;;  %v405_v44 = vld [vmem:[%s1535_s8 + $0xd8] sm:$0xff]  ;;  %v882_v45 = vpack.c.bf16 %v272_v35, %v271_v34  ;;  %v884_v48 = vpack.c.bf16 %v290_v38, %v289_v36 }
  0x26   :  { %257 = vmatmul.mubr.f32.vlgmr.msra.gmra.mrb[0].mxu1 %v185_v50  ;;  %867 = vmatpush3.bf16.msra.mxu0 %v866_v51  ;;  %v273_v46 = vld [vmem:[%s1534_s7 + $0x50] sm:$0xff]  ;;  %v1397_v47 = vld [vmem:[%s1531_s4] sm:$0x7]  ;;  %v274_v49 = vld [vmem:[%s1534_s7 + $0x58] sm:$0xff]  ;;  %v914_v51 = vpack.c.bf16 %v387_v42, %v386_v41 }
  0x27   :  { %869 = vmatprep.subr.bf16.mxu0 %v868_v55  ;;  %899 = vmatpush3.bf16.msra.mxu1 %v898_v60  ;;  %v291_v50 = vld [vmem:[%s1534_s7 + $0xe0] sm:$0xff]  ;;  %v434_v52 = vrot.slane %v1397_v47, %v1191_v10 }
  0x28   :  { %370 = vmatprep.mubr.f32.mxu0 %v303_v1  ;;  %901 = vmatprep.subr.bf16.mxu1 %v900_v2 }
  0x2a   :  { %871 = vmatpush3.bf16.msra.mxu0 %v870_v5 }
  0x2b   :  { %873 = vmatprep.subr.bf16.mxu0 %v872_v8  ;;  %903 = vmatpush3.bf16.msra.mxu1 %v902_v13 }
  0x2c   :  { %905 = vmatprep.subr.bf16.mxu1 %v904_v15 }
  0x2e   :  { %875 = vmatpush3.bf16.msra.mxu0 %v874_v20 }
  0x2f   :  { %877 = vmatprep.subr.bf16.mxu0 %v876_v21  ;;  %907 = vmatpush3.bf16.msra.mxu1 %v906_v25 }
  0x30   :  { %909 = vmatprep.subr.bf16.mxu1 %v908_v27 }
  0x32   :  { %879 = vmatpush3.bf16.msra.mxu0 %v878_v32 }
  0x33   :  { %881 = vmatprep.subr.bf16.mxu0 %v880_v33  ;;  %911 = vmatpush3.bf16.msra.mxu1 %v910_v37 }
  0x34   :  { %15 = vsyncpa [#allocation4], 0  ;;  %v292_v53 = vld [vmem:[%s1534_s7 + $0xe8] sm:$0xff]  ;;  %913 = vmatprep.subr.bf16.mxu1 %v912_v40  ;;  %v916_v54 = vpack.c.bf16 %v405_v44, %v404_v43  ;;  %v388_v55 = vld [vmem:[%s1535_s8 + $0x50] sm:$0xff]  ;;  %506 = vmatprep.mubr.f32.mxu1 %v434_v52  ;;  %v886_v58 = vpack.c.bf16 %v274_v49, %v273_v46  ;;  %v299_v21 = vrot.slane %v1297_v62, %v1253_v39  ;;  %v984_v24 = vmov 0.0|0.0   ;;  %s987_s5 = smov [#allocation3]  }
  0x35   :  { %v389_v56 = vld [vmem:[%s1535_s8 + $0x58] sm:$0xff]  ;;  %v406_v57 = vld [vmem:[%s1535_s8 + $0xe0] sm:$0xff]  ;;  %v407_v10 = vld [vmem:[%s1535_s8 + $0xe8] sm:$0xff]  ;;  %v888_v59 = vpack.c.bf16 %v292_v53, %v291_v50  ;;  %v430_v23 = vrot.slane %v1397_v47, %v1253_v39  ;;  %vm985_vm0 = vmmov 0   ;;  %v986_v28 = vmov 0.0   ;;  %s600_s17 = sshll.u32 %s987_s5, 4  ;;  %s601_s17 = int_to_ptr.vmem [resolvable:$true] %s600_s17 }
  0x36   :  { %883 = vmatpush3.bf16.msra.mxu0 %v882_v45  ;;  %v275_v60 = vld [vmem:[%s1534_s7 + $0x60] sm:$0xff]  ;;  %v276_v63 = vld [vmem:[%s1534_s7 + $0x68] sm:$0xff]  ;;  %v293_v0 = vld [vmem:[%s1534_s7 + $0xf0] sm:$0xff]  ;;  %v918_v1 = vpack.c.bf16 %v389_v56, %v388_v55  ;;  %v920_v3 = vpack.c.bf16 %v407_v10, %v406_v57  ;;  %v437_v45 = vsub.s32 2, %v1164_v61  ;;  %vm592_vm1 = vcmask 57344   ;;  %s960_s18 = scalar_lea.vmem %s601_s17, 16  ;;  %p965_p1 = scmp.lt.s32.totalorder %s601_s17, %s601_s17 }
  0x37   :  { %885 = vmatprep.subr.bf16.mxu0 %v884_v48  ;;  %915 = vmatpush3.bf16.msra.mxu1 %v914_v51  ;;  %v294_v2 = vld [vmem:[%s1534_s7 + $0xf8] sm:$0xff]  ;;  %v390_v4 = vld [vmem:[%s1535_s8 + $0x60] sm:$0xff]  ;;  %v391_v5 = vld [vmem:[%s1535_s8 + $0x68] sm:$0xff]  ;;  %v890_v8 = vpack.c.bf16 %v276_v63, %v275_v60  ;;  %p961_p0 = scmp.ne.s32.totalorder %s601_s17, %s960_s18  ;;  %s964_s19 = scalar_lea.vmem %s601_s17, 32 }
  0x38   :  { %917 = vmatprep.subr.bf16.mxu1 %v916_v54  ;;  %v408_v6 = vld [vmem:[%s1535_s8 + $0xf0] sm:$0xff]  ;;  %v409_v7 = vld [vmem:[%s1535_s8 + $0xf8] sm:$0xff]  ;;  %v892_v9 = vpack.c.bf16 %v294_v2, %v293_v0  ;;  %v922_v13 = vpack.c.bf16 %v391_v5, %v390_v4  ;;  %v410_v18 = vld [vmem:[%s1535_s8 + $0x100] sm:$0xff]  ;;  %v438_v48 = vrot.slane %v1397_v47, %v437_v45  ;;  %v584_v47 = vstv %s1527_s0  ;;  %p966_p2 = scmp.lt.s32.totalorder %s964_s19, %s960_s18 }
  0x39   :  { %v277_v11 = vld [vmem:[%s1534_s7 + $0x70] sm:$0xff]  ;;  %v278_v12 = vld [vmem:[%s1534_s7 + $0x78] sm:$0xff]  ;;  %v924_v14 = vpack.c.bf16 %v409_v7, %v408_v6  ;;  %v411_v19 = vld [vmem:[%s1535_s8 + $0x108] sm:$0xff] }
  0x3a   :  { %887 = vmatpush3.bf16.msra.mxu0 %v886_v58  ;;  %v392_v15 = vld [vmem:[%s1535_s8 + $0x70] sm:$0xff]  ;;  %v393_v16 = vld [vmem:[%s1535_s8 + $0x78] sm:$0xff]  ;;  %v894_v17 = vpack.c.bf16 %v278_v12, %v277_v11  ;;  %v929_v22 = vpack.c.bf16 %v411_v19, %v410_v18  ;;  %v414_v39 = vld [vmem:[%s1535_s8 + $0x120] sm:$0xff]  ;;  %p967_p3 = por %p966_p2, %p965_p1 }
  0x3b   :  { %889 = vmatprep.subr.bf16.mxu0 %v888_v59  ;;  %919 = vmatpush3.bf16.msra.mxu1 %v918_v1  ;;  %v926_v20 = vpack.c.bf16 %v393_v16, %v392_v15  ;;  %v412_v25 = vld [vmem:[%s1535_s8 + $0x110] sm:$0xff]  ;;  %v413_v26 = vld [vmem:[%s1535_s8 + $0x118] sm:$0xff]  ;;  %v415_v62 = vld [vmem:[%s1535_s8 + $0x128] sm:$0xff] }
  0x3c   :  { %921 = vmatprep.subr.bf16.mxu1 %v920_v3  ;;  %v932_v27 = vpack.c.bf16 %v413_v26, %v412_v25  ;;  %v935_v29 = vpack.c.bf16 %v415_v62, %v414_v39  ;;  %v416_v30 = vld [vmem:[%s1535_s8 + $0x130] sm:$0xff]  ;;  %v417_v31 = vld [vmem:[%s1535_s8 + $0x138] sm:$0xff]  ;;  %v418_v33 = vld [vmem:[%s1535_s8 + $0x140] sm:$0xff]  ;;  %p968_p4 = pnand %p967_p3, %p961_p0 }
  0x3d   :  { %v938_v32 = vpack.c.bf16 %v417_v31, %v416_v30  ;;  %v419_v34 = vld [vmem:[%s1535_s8 + $0x148] sm:$0xff]  ;;  %v420_v36 = vld [vmem:[%s1535_s8 + $0x150] sm:$0xff]  ;;  %v421_v37 = vld [vmem:[%s1535_s8 + $0x158] sm:$0xff] }
  0x3e   :  { %891 = vmatpush3.bf16.msra.mxu0 %v890_v8  ;;  %v941_v35 = vpack.c.bf16 %v419_v34, %v418_v33  ;;  %v944_v38 = vpack.c.bf16 %v421_v37, %v420_v36  ;;  %v422_v40 = vld [vmem:[%s1535_s8 + $0x160] sm:$0xff]  ;;  %v423_v41 = vld [vmem:[%s1535_s8 + $0x168] sm:$0xff]  ;;  %v424_v43 = vld [vmem:[%s1535_s8 + $0x170] sm:$0xff] }
  0x3f   :  { %893 = vmatprep.subr.bf16.mxu0 %v892_v9  ;;  %923 = vmatpush3.bf16.msra.mxu1 %v922_v13  ;;  %v947_v42 = vpack.c.bf16 %v423_v41, %v422_v40  ;;  %v425_v44 = vld [vmem:[%s1535_s8 + $0x178] sm:$0xff] }
  0x40   :  { %925 = vmatprep.subr.bf16.mxu1 %v924_v14  ;;  %v950_v46 = vpack.c.bf16 %v425_v44, %v424_v43 }
  0x42   :  { %895 = vmatpush3.bf16.msra.mxu0 %v894_v17 }
  0x43   :  { %928 = vmatprep.subr.bf16.mxu0 %v984_v24  ;;  %927 = vmatpush3.bf16.msra.mxu1 %v926_v20 }
  0x45   :  { %371 = vmatmul.mubr.f32.vlgmr.msra.gmra.mrb[2].mxu0 %v299_v21 }
  0x46   :  { %930 = vmatpush3.bf16.msra.mxu0 %v929_v22  ;;  %507 = vmatmul.mubr.f32.vlgmr.msra.gmra.mrb[2].mxu1 %v430_v23 }
  0x47   :  { %931 = vmatprep.subr.bf16.mxu0 %v984_v24  ;;  %797 = vmatprep.mubr.msk.f32.mxu0 %vm985_vm0, %v986_v28 }
  0x4a   :  { %933 = vmatpush3.bf16.msra.mxu0 %v932_v27 }
  0x4b   :  { %934 = vmatprep.subr.bf16.mxu0 %v984_v24 }
  0x4e   :  { %936 = vmatpush3.bf16.msra.mxu0 %v935_v29 }
  0x4f   :  { %937 = vmatprep.subr.bf16.mxu0 %v984_v24 }
  0x52   :  { %939 = vmatpush3.bf16.msra.mxu0 %v938_v32 }
  0x53   :  { %940 = vmatprep.subr.bf16.mxu0 %v984_v24 }
  0x56   :  { %942 = vmatpush3.bf16.msra.mxu0 %v941_v35 }
  0x57   :  { %943 = vmatprep.subr.bf16.mxu0 %v984_v24 }
  0x5a   :  { %945 = vmatpush3.bf16.msra.mxu0 %v944_v38 }
  0x5b   :  { %946 = vmatprep.subr.bf16.mxu0 %v984_v24 }
  0x5e   :  { %948 = vmatpush3.bf16.msra.mxu0 %v947_v42 }
  0x5f   :  { %949 = vmatprep.subr.bf16.mxu0 %v984_v24 }
  0x62   :  { %951 = vmatpush3.bf16.msra.mxu0 %v950_v46 }
  0x65   :  { %798 = vmatmul.mubr.f32.vlgmr.msra.gmra.mrb[4].mxu0 %v438_v48 }
  0xf8   :  { %v640_v49 = vpop.f32.mrb[0].mxu0 }
  0xf9   :  { %v675_v50 = vpop.f32.mrb[0].mxu1  ;;  %v641_v51 = vpop.f32.mrb[1].mxu0 }
  0xfa   :  { %v642_v52 = vadd.f32 %v641_v51, %v640_v49  ;;  %v676_v53 = vpop.f32.mrb[1].mxu1 }
  0xfb   :  { %v677_v54 = vadd.f32 %v676_v53, %v675_v50 }
  0xfd   :  { %v259_v55 = vadd.f32 %v677_v54, %v642_v52 }
 0x118   :  { %v710_v56 = vpop.f32.mrb[2].mxu0 }
 0x119   :  { %v711_v57 = vpop.f32.mrb[3].mxu0  ;;  %v745_v10 = vpop.f32.mrb[2].mxu1 }
 0x11a   :  { %v712_v58 = vadd.f32 %v711_v57, %v710_v56  ;;  %v746_v59 = vpop.f32.mrb[3].mxu1 }
 0x11b   :  { %v747_v61 = vadd.f32 %v746_v59, %v745_v10 }
 0x11c   :  { %v376_v60 = vadd.f32 %v712_v58, %v259_v55 }
 0x138   :  { %v578_v63 = vpop.f32.mrb[4].mxu0 }
 0x139   :  { %v579_v0 = vadd.f32 %v747_v61, %v578_v63  ;;  %v799_v1 = vpop.f32.mrb[5].mxu0 }
 0x13b   :  { %v582_v2 = vadd.f32 %v579_v0, %v376_v60 }
 0x13d   :  { %v585_v3 = vadd.f32 %v584_v47, %v582_v2 }
 0x13f   :  { %v586_v4 = vsub.f32 0.0, %v585_v3 }
 0x141   :  { %v587_v5 = vmul.f32 1.442695, %v586_v4 }
 0x143   :  { %956 = vpow2.f32 %v587_v5 }
 0x14d   :  { %v957_v6 = vpop.eup %956 }
 0x14e   :  { %v589_v7 = vadd.f32 1.0, %v957_v6 }
 0x150   :  { %958 = vrcp.f32 %v589_v7 }
 0x15a   :  { %v959_v8 = vpop.eup %958 }
 0x15b   :  { %593 = vst.msk [vmem:[#allocation3] sm:$0x1] %vm592_vm1, %v959_v8 }
 0x15c   :  { %971 = shalt.err (!%p968_p4)
}
 0x15d   :  { %s972_s21 = scalar_lea.hbm %s1536_s9, 16 }
 0x15e   :  { %p973_p5 = scmp.ne.s32.totalorder %s1536_s9, %s972_s21  ;;  %p976_p6 = scmp.lt.u32.totalorder %s972_s21, %s1536_s9 }
 0x160   :  { %p978_p7 = pnand %p976_p6, %p973_p5 }
 0x162   :  { %981 = shalt.err (!%p978_p7)
}
 0x163   :  { %603 = dma.vmem_to_hbm [thread:$0]  %s601_s17, 16, %s1536_s9, [#allocation4]  }
 0x164   :  { %982 = dma.done.wait [#allocation4], 16  }
 0x165   :  { %983 = vsyncadd [#allocation4], 4294967280 }
 0x166   :  { %607 = vsyncpa [#allocation4], 1 }

</bundles_post_ra>
